<compile_context>
chip_gen: v7x
topology: tpu7x:2x2x1
jax: 0.10.0
libtpu: 0.0.40
codegen_flags: <defaults>
</compile_context>

<pallas_src>
import jax
import jax.numpy as jnp
from jax.experimental import pallas as pl
from jax.experimental.pallas import tpu as pltpu


def _encoder_kernel(sig_ref, w1_ref, b1_ref, w2_ref, b2_ref, eps_ref, out_ref):
    # First matmul: [TB, S] @ [S, H]  (operands cast to the weight dtype so
    # bf16-on-MXU works; accumulation always f32 via preferred_element_type).
    x = sig_ref[...].astype(w1_ref.dtype)
    h = jnp.tanh(
        jnp.dot(x, w1_ref[...], preferred_element_type=jnp.float32) + b1_ref[...]
    )

    # Split output projection: two [TB, H] @ [H, Z] matmuls (no lane slicing
    # at a non-128 boundary inside the kernel).
    hm = h.astype(w2_ref.dtype)
    mean = jnp.dot(hm, w2_ref[0], preferred_element_type=jnp.float32) + b2_ref[0]
    logvar = jnp.dot(hm, w2_ref[1], preferred_element_type=jnp.float32) + b2_ref[1]

    # exp goes to the EUP (separate bundle slot); reparameterization on the VPU.
    std = jnp.exp(logvar * 0.5) + 1e-8
    z0 = mean + std * eps_ref[...]

    # Single lane-contiguous output slab: [z0 | mean | std] -> one writeback DMA.
    out_ref[...] = jnp.concatenate([z0, mean, std], axis=-1)


def pack_encoder_params(w1, b1, w2, b2, mask, *, num_states, use_bf16=False):
    """One-time host-side transform of the MaskedNet parameters.

    - folds the static used_signals mask into w1,
    - splits w2/b2 ([H, 2Z] / [1, 2Z]) into stacked mean/logvar halves,
    - optionally casts the matmul weights to bf16 (biases stay f32).
    """
    w1m = (w1 * mask.reshape(-1, 1)).astype(jnp.float32)
    w2p = jnp.stack([w2[:, :num_states], w2[:, num_states:]], axis=0)  # [2, H, Z]
    b2p = jnp.stack([b2[:, :num_states], b2[:, num_states:]], axis=0)  # [2, 1, Z]
    if use_bf16:
        w1m = w1m.astype(jnp.bfloat16)
        w2p = w2p.astype(jnp.bfloat16)
    return w1m, b1.astype(jnp.float32), w2p.astype(w1m.dtype), b2p.astype(jnp.float32)


def encoder_forward(signal, params, eps, *, num_states, variational=True,
                    training=True, rng_key=None, block_batch=512):
    """Mirrors Encoder.forward. Returns (z0, (mean, std)) or (z0, None)."""
    batch_size = signal.shape[0]

    if not variational:
        # z0 = zeros, q = None (no kernel needed).
        return jnp.zeros((batch_size, num_states), signal.dtype), None

    if not training:
        # z0 ~ N(0, I), q = None (plain JAX glue, no kernel needed).
        if rng_key is None:
            raise ValueError("encoder_forward(training=False) requires rng_key")
        z0 = jax.random.normal(rng_key, (batch_size, num_states), signal.dtype)
        return z0, None

    w1m, b1, w2p, b2p = params
    B, S = signal.shape
    H = w1m.shape[1]
    Z = num_states

    # Batch tile: whole batch if it is small, else a multiple-of-8 tile so the
    # BlockSpec pipeline double-buffers signal/eps/out across grid steps while
    # the (tiny) weights stay resident in VMEM via index_map -> (0, 0).
    if B <= block_batch:
        tb = B
        grid = (1,)
    else:
        tb = max(8, (block_batch // 8) * 8)
        grid = (pl.cdiv(B, tb),)

    out = pl.pallas_call(
        _encoder_kernel,
        out_shape=jax.ShapeDtypeStruct((B, 3 * Z), jnp.float32),
        grid=grid,
        in_specs=[
            pl.BlockSpec((tb, S), lambda i: (i, 0)),        # signal (tiled over batch)
            pl.BlockSpec((S, H), lambda i: (0, 0)),         # w1 (mask folded in, resident)
            pl.BlockSpec((1, H), lambda i: (0, 0)),         # b1
            pl.BlockSpec((2, H, Z), lambda i: (0, 0, 0)),   # w2 packed [mean; logvar]
            pl.BlockSpec((2, 1, Z), lambda i: (0, 0, 0)),   # b2 packed
            pl.BlockSpec((tb, Z), lambda i: (i, 0)),        # eps (tiled over batch)
        ],
        out_specs=pl.BlockSpec((tb, 3 * Z), lambda i: (i, 0)),
        compiler_params=pltpu.CompilerParams(
            dimension_semantics=("parallel",),              # lets v7x use both TCs
        ),
    )(signal, w1m, b1, w2p, b2p, eps)

    z0 = out[:, :Z]
    mean = out[:, Z:2 * Z]
    std = out[:, 2 * Z:]
    return z0, (mean, std)


if __name__ == "__main__":
    # Small, deterministic problem sizes consistent with the module.
    batch = 16
    num_signals = 16
    hidden = 32                 # net_config['net'] = [32]
    num_states = 8
    used_signals = [0, 1, 2, 3, 5, 7, 11, 13]

    key = jax.random.PRNGKey(0)
    k_sig, k_w1, k_b1, k_w2, k_b2, k_eps = jax.random.split(key, 6)

    signal = jax.random.normal(k_sig, (batch, num_signals), jnp.float32)

    # Deterministic "MaskedNet" parameters.
    w1 = 0.1 * jax.random.normal(k_w1, (num_signals, hidden), jnp.float32)
    b1 = 0.1 * jax.random.normal(k_b1, (1, hidden), jnp.float32)
    w2 = 0.1 * jax.random.normal(k_w2, (hidden, 2 * num_states), jnp.float32)
    b2 = 0.1 * jax.random.normal(k_b2, (1, 2 * num_states), jnp.float32)

    # Input mask encoding `used_signals`.
    mask = jnp.zeros((1, num_signals), jnp.float32).at[0, jnp.array(used_signals)].set(1.0)

    # Standard-normal noise for the reparameterization trick.
    eps = jax.random.normal(k_eps, (batch, num_states), jnp.float32)

    # Pure-JAX reference.
    x = signal * mask
    h = jnp.tanh(x @ w1 + b1)
    out_ref = h @ w2 + b2
    mean_ref = out_ref[:, :num_states]
    std_ref = jnp.exp(out_ref[:, num_states:] / 2.0) + 1e-8
    z0_ref = mean_ref + std_ref * eps

    # --- f32 path, tiled grid (block_batch=8 -> grid=(2,)), tight tolerance ---
    params_f32 = pack_encoder_params(w1, b1, w2, b2, mask,
                                     num_states=num_states, use_bf16=False)
    z0, q = encoder_forward(signal, params_f32, eps, num_states=num_states,
                            variational=True, training=True, block_batch=8)
    jax.block_until_ready(z0)
    mean, std = q
    assert jnp.allclose(z0, z0_ref, atol=1e-5), "z0 mismatch (f32)"
    assert jnp.allclose(mean, mean_ref, atol=1e-5), "mean mismatch (f32)"
    assert jnp.allclose(std, std_ref, atol=1e-5), "std mismatch (f32)"

    # --- f32 path, single-block grid (whole batch in one tile) ---
    z0_s, q_s = encoder_forward(signal, params_f32, eps, num_states=num_states,
                                variational=True, training=True)
    jax.block_until_ready(z0_s)
    assert jnp.allclose(z0_s, z0_ref, atol=1e-5), "z0 mismatch (single block)"

    # --- bf16 MXU-operand path (v6e/v7x bandwidth saver), loose tolerance ---
    params_bf16 = pack_encoder_params(w1, b1, w2, b2, mask,
                                      num_states=num_states, use_bf16=True)
    z0_b, q_b = encoder_forward(signal, params_bf16, eps, num_states=num_states,
                                variational=True, training=True)
    jax.block_until_ready(z0_b)
    mean_b, std_b = q_b
    assert jnp.allclose(z0_b, z0_ref, atol=5e-2), "z0 mismatch (bf16)"
    assert jnp.allclose(mean_b, mean_ref, atol=5e-2), "mean mismatch (bf16)"
    assert jnp.allclose(std_b, std_ref, atol=5e-2), "std mismatch (bf16)"

    # --- non-variational and eval paths (plain JAX glue, no kernel needed) ---
    z0_nv, q_nv = encoder_forward(signal, params_f32, eps, num_states=num_states,
                                  variational=False)
    assert q_nv is None and jnp.all(z0_nv == 0.0)
    z0_ev, q_ev = encoder_forward(signal, params_f32, eps, num_states=num_states,
                                  variational=True, training=False,
                                  rng_key=jax.random.PRNGKey(1))
    jax.block_until_ready(z0_ev)
    assert q_ev is None and z0_ev.shape == (batch, num_states)

    print("KERNEL_OK")
</pallas_src>

<mosaic_0001>
module attributes {stable_mosaic.version = 11 : i64} {
  func.func @_encoder_kernel(%arg0: i32, %arg1: memref<8x16xf32, #tpu.memory_space<vmem>>, %arg2: memref<16x32xf32, #tpu.memory_space<vmem>>, %arg3: memref<1x32xf32, #tpu.memory_space<vmem>>, %arg4: memref<2x32x8xf32, #tpu.memory_space<vmem>>, %arg5: memref<2x1x8xf32, #tpu.memory_space<vmem>>, %arg6: memref<8x8xf32, #tpu.memory_space<vmem>>, %arg7: memref<8x24xf32, #tpu.memory_space<vmem>>) attributes {dimension_semantics = [#tpu.dimension_semantics<parallel>], iteration_bounds = array<i64: 2>, scalar_prefetch = 0 : i64, scratch_operands = 0 : i64, tpu.core_type = #tpu.core_type<tc>, window_params = [{transform_indices = @transform_0, window_bounds = array<i64: 8, 16>}, {pipeline_mode = #tpu.pipeline_mode<synchronous>, transform_indices = @transform_1, window_bounds = array<i64: 16, 32>}, {pipeline_mode = #tpu.pipeline_mode<synchronous>, transform_indices = @transform_2, window_bounds = array<i64: 1, 32>}, {pipeline_mode = #tpu.pipeline_mode<synchronous>, transform_indices = @transform_3, window_bounds = array<i64: 2, 32, 8>}, {pipeline_mode = #tpu.pipeline_mode<synchronous>, transform_indices = @transform_4, window_bounds = array<i64: 2, 1, 8>}, {transform_indices = @transform_5, window_bounds = array<i64: 8, 8>}, {transform_indices = @transform_6, window_bounds = array<i64: 8, 24>}]} {
    %c0 = arith.constant 0 : index
    %c0_0 = arith.constant 0 : index
    %0 = vector.load %arg1[%c0, %c0_0] : memref<8x16xf32, #tpu.memory_space<vmem>>, vector<8x16xf32>
    %c0_1 = arith.constant 0 : index
    %c0_2 = arith.constant 0 : index
    %1 = vector.load %arg2[%c0_1, %c0_2] : memref<16x32xf32, #tpu.memory_space<vmem>>, vector<16x32xf32>
    %cst = arith.constant dense<0.000000e+00> : vector<8x32xf32>
    %2 = tpu.matmul %0, %1, %cst {dimension_numbers = #tpu.dot_dimension_numbers<[1], [0], [0], [1], [0, 0, 1, 1], [], []>} : vector<8x16xf32>, vector<16x32xf32>, vector<8x32xf32> -> vector<8x32xf32>
    %c0_3 = arith.constant 0 : index
    %c0_4 = arith.constant 0 : index
    %3 = vector.load %arg3[%c0_3, %c0_4] : memref<1x32xf32, #tpu.memory_space<vmem>>, vector<1x32xf32>
    %4 = vector.broadcast %3 : vector<1x32xf32> to vector<8x32xf32>
    %5 = arith.addf %2, %4 : vector<8x32xf32>
    %6 = math.tanh %5 : vector<8x32xf32>
    %c0_5 = arith.constant 0 : index
    %c0_6 = arith.constant 0 : index
    %c0_7 = arith.constant 0 : index
    %7 = vector.load %arg4[%c0_5, %c0_6, %c0_7] : memref<2x32x8xf32, #tpu.memory_space<vmem>>, vector<1x32x8xf32>
    %8 = vector.shape_cast %7 : vector<1x32x8xf32> to vector<32x8xf32>
    %cst_8 = arith.constant dense<0.000000e+00> : vector<8x8xf32>
    %9 = tpu.matmul %6, %8, %cst_8 {dimension_numbers = #tpu.dot_dimension_numbers<[1], [0], [0], [1], [0, 0, 1, 1], [], []>} : vector<8x32xf32>, vector<32x8xf32>, vector<8x8xf32> -> vector<8x8xf32>
    %c0_9 = arith.constant 0 : index
    %c0_10 = arith.constant 0 : index
    %c0_11 = arith.constant 0 : index
    %10 = vector.load %arg5[%c0_9, %c0_10, %c0_11] : memref<2x1x8xf32, #tpu.memory_space<vmem>>, vector<1x1x8xf32>
    %11 = vector.shape_cast %10 : vector<1x1x8xf32> to vector<1x8xf32>
    %12 = vector.broadcast %11 : vector<1x8xf32> to vector<8x8xf32>
    %13 = arith.addf %9, %12 : vector<8x8xf32>
    %c1 = arith.constant 1 : index
    %c0_12 = arith.constant 0 : index
    %c0_13 = arith.constant 0 : index
    %14 = vector.load %arg4[%c1, %c0_12, %c0_13] : memref<2x32x8xf32, #tpu.memory_space<vmem>>, vector<1x32x8xf32>
    %15 = vector.shape_cast %14 : vector<1x32x8xf32> to vector<32x8xf32>
    %cst_14 = arith.constant dense<0.000000e+00> : vector<8x8xf32>
    %16 = tpu.matmul %6, %15, %cst_14 {dimension_numbers = #tpu.dot_dimension_numbers<[1], [0], [0], [1], [0, 0, 1, 1], [], []>} : vector<8x32xf32>, vector<32x8xf32>, vector<8x8xf32> -> vector<8x8xf32>
    %c1_15 = arith.constant 1 : index
    %c0_16 = arith.constant 0 : index
    %c0_17 = arith.constant 0 : index
    %17 = vector.load %arg5[%c1_15, %c0_16, %c0_17] : memref<2x1x8xf32, #tpu.memory_space<vmem>>, vector<1x1x8xf32>
    %18 = vector.shape_cast %17 : vector<1x1x8xf32> to vector<1x8xf32>
    %19 = vector.broadcast %18 : vector<1x8xf32> to vector<8x8xf32>
    %20 = arith.addf %16, %19 : vector<8x8xf32>
    %cst_18 = arith.constant 5.000000e-01 : f32
    %21 = vector.broadcast %cst_18 : f32 to vector<8x8xf32>
    %22 = arith.mulf %20, %21 : vector<8x8xf32>
    %23 = math.exp %22 : vector<8x8xf32>
    %cst_19 = arith.constant 9.99999993E-9 : f32
    %24 = vector.broadcast %cst_19 : f32 to vector<8x8xf32>
    %25 = arith.addf %23, %24 : vector<8x8xf32>
    %c0_20 = arith.constant 0 : index
    %c0_21 = arith.constant 0 : index
    %26 = vector.load %arg6[%c0_20, %c0_21] : memref<8x8xf32, #tpu.memory_space<vmem>>, vector<8x8xf32>
    %27 = arith.mulf %25, %26 : vector<8x8xf32>
    %28 = arith.addf %13, %27 : vector<8x8xf32>
    %29 = tpu.concatenate %28, %13, %25 in 1 : vector<8x8xf32>, vector<8x8xf32>, vector<8x8xf32> -> vector<8x24xf32>
    %c0_22 = arith.constant 0 : index
    %c0_23 = arith.constant 0 : index
    %30 = vector.load %arg7[%c0_22, %c0_23] : memref<8x24xf32, #tpu.memory_space<vmem>>, vector<8x24xf32>
    tpu.vector_store %arg7[%c0_22, %c0_23], %29 {strides = array<i32>} : memref<8x24xf32, #tpu.memory_space<vmem>>, vector<8x24xf32>,
    return
  }
  func.func @transform_0(%arg0: i32) -> (i32, i32) {
    %c0_i32 = arith.constant 0 : i32
    %c0_i32_0 = arith.constant 0 : i32
    return %arg0, %c0_i32 : i32, i32
  }
  func.func @transform_1(%arg0: i32) -> (i32, i32) {
    %c0_i32 = arith.constant 0 : i32
    %c0_i32_0 = arith.constant 0 : i32
    %c0_i32_1 = arith.constant 0 : i32
    return %c0_i32, %c0_i32_0 : i32, i32
  }
  func.func @transform_2(%arg0: i32) -> (i32, i32) {
    %c0_i32 = arith.constant 0 : i32
    %c0_i32_0 = arith.constant 0 : i32
    %c0_i32_1 = arith.constant 0 : i32
    return %c0_i32, %c0_i32_0 : i32, i32
  }
  func.func @transform_3(%arg0: i32) -> (i32, i32, i32) {
    %c0_i32 = arith.constant 0 : i32
    %c0_i32_0 = arith.constant 0 : i32
    %c0_i32_1 = arith.constant 0 : i32
    %c0_i32_2 = arith.constant 0 : i32
    return %c0_i32, %c0_i32_0, %c0_i32_1 : i32, i32, i32
  }
  func.func @transform_4(%arg0: i32) -> (i32, i32, i32) {
    %c0_i32 = arith.constant 0 : i32
    %c0_i32_0 = arith.constant 0 : i32
    %c0_i32_1 = arith.constant 0 : i32
    %c0_i32_2 = arith.constant 0 : i32
    return %c0_i32, %c0_i32_0, %c0_i32_1 : i32, i32, i32
  }
  func.func @transform_5(%arg0: i32) -> (i32, i32) {
    %c0_i32 = arith.constant 0 : i32
    %c0_i32_0 = arith.constant 0 : i32
    return %arg0, %c0_i32 : i32, i32
  }
  func.func @transform_6(%arg0: i32) -> (i32, i32) {
    %c0_i32 = arith.constant 0 : i32
    %c0_i32_0 = arith.constant 0 : i32
    return %arg0, %c0_i32 : i32, i32
  }
}

</mosaic_0001>

<bundles_post_ra>
// kernel: tpu_custom_call.1
= control target key start
LH: loop header
LB: loop body
LE: loop exit
PB: predicated region body
PF: predicated region fallthrough
CT: control target
= control target key end

     0   :  { %11 = vsyncpa [#allocation3], 0  ;;  %s1005_s0 = inlined_call_operand.vmem [shape: f32[16,16], index: 0, kind: input, shape index: {}]   ;;  %s1006_s1 = inlined_call_operand.vmem [shape: f32[16,32], index: 1, kind: input, shape index: {}]   ;;  %s1007_s2 = inlined_call_operand.vmem [shape: f32[1,32], index: 2, kind: input, shape index: {}]   ;;  %s1008_s3 = inlined_call_operand.vmem [shape: f32[2,32,8], index: 3, kind: input, shape index: {}]   ;;  %s1009_s4 = inlined_call_operand.vmem [shape: f32[2,1,8], index: 4, kind: input, shape index: {}]   ;;  %s1010_s5 = inlined_call_operand.vmem [shape: f32[16,8], index: 5, kind: input, shape index: {}]   ;;  %s1011_s6 = inlined_call_operand.hbm [shape: f32[16,24], index: 6, kind: output, shape index: {}]  }
   0x1   :  { %13 = vsyncpa [#allocation3 + $0x1], 0  ;;  %s854_s21 = smov 0   ;;  %s856_s22 = smov 0  }
   0x2   :  { %s858_s23 = smov 0   ;;  %s860_s24 = smov 0  }
   0x3 LB: > { %s875_s25 = sadd.s32 4294967295, %s811_s24   ;;  %s622_s26 = sadd.s32 4294967294, %s811_s24   ;;  %s811_s24 = sphi %s860_s24, %s1017_s24   ;;  %s807_s23 = sphi %s858_s23, %s1016_s23   ;;  %s803_s22 = sphi %s856_s22, %s1015_s22   ;;  %s799_s21 = sphi %s854_s21, %s1014_s21  }
   0x4   : > { %s879_s27 = sadd.s32 1, %s811_s24   ;;  %s162_s28 = sadd.s32 1, %s807_s23 }
   0x5   : > { %s159_s29 = ssub.s32 %s811_s24, %s879_s27  ;;  %p172_p0 = scmp.ne.s32.totalorder %s807_s23, %s803_s22 }
   0x6   : > { %p160_p1 = scmp.eq.s32.totalorder %s159_s29, 0  ;;  %p173_p2 = scmp.eq.s32.totalorder %s875_s25, 1 }
   0x7   : > { %p178_p3 = scmp.ne.s32.totalorder %s803_s22, %s799_s21  ;;  %p179_p4 = scmp.eq.s32.totalorder %s622_s26, 1 }
   0x8   : > { %s890_s30 = scalar_select %p160_p1, %s807_s23, %s162_s28  }
   0x9   : > { %p892_p5 = por %p173_p2, %p172_p0  ;;  %p896_p6 = por %p179_p4, %p178_p3 }
   0xa   : > { %p625_p7 = scmp.ge.s32.totalorder %s811_s24, 1  ;;  %p223_p8 = scmp.lt.s32.totalorder %s811_s24, 3 }
   0xc   : > { %p224_p9 = pnand %p625_p7, %p223_p8 }
   0xd   : > { %v265_v0 = vld [vmem:[%s1006_s1] sm:$0xff] (!%p224_p9)  ;;  %v266_v1 = vld [vmem:[%s1006_s1 + $0x8] sm:$0xff] (!%p224_p9)  ;;  %p256_p10 = scmp.lt.s32.totalorder (!%p224_p9), %s875_s25, 1  ;;  %v813_v2 = vmov (!%p224_p9), 0.0|0.0   ;;  %vm814_vm0 = vmmov (!%p224_p9), 0   ;;  %v815_v4 = vmov (!%p224_p9), 0.0  }
   0xe   : > { %227 = sbr.rel (%p224_p9) target bundleno = 612 (0x264), region = 44  ;;  %686 = vmatprep.subr.bf16.mxu0 (!%p224_p9), %v813_v2  ;;  %v687_v3 = vpack.c.bf16 (!%p224_p9), %v266_v1, %v265_v0  ;;  %661 = vmatprep.mubr.msk.f32.mxu0 (!%p224_p9), %vm814_vm0, %v815_v4  ;;  %vm274_vm1 = vcmask (!%p224_p9), 130048   ;;  %v349_v6 = vld [vmem:[%s1008_s3] sm:$0xff] (!%p224_p9)  ;;  %v350_v7 = vld [vmem:[%s1008_s3 + $0x8] sm:$0xff] (!%p224_p9)  ;;  %v351_v11 = vld [vmem:[%s1008_s3 + $0x10] sm:$0xff] (!%p224_p9)  ;;  %vm360_vm2 = vcmask (!%p224_p9), 261120  }
   0xf   : > { %689 = vmatprep.subr.bf16.mxu1 (!%p224_p9), %v813_v2  ;;  %672 = vmatprep.mubr.msk.f32.mxu1 (!%p224_p9), %vm814_vm0, %v815_v4  ;;  %v633_v8 = vld [vmem:[%s1008_s3 + $0x20] sm:$0xff] (!%p224_p9)  ;;  %v690_v9 = vpack.c.bf16 (!%p224_p9), %v350_v7, %v349_v6  ;;  %v634_v10 = vld [vmem:[%s1008_s3 + $0x28] sm:$0xff] (!%p224_p9)  ;;  %v352_v12 = vld [vmem:[%s1008_s3 + $0x18] sm:$0xff] (!%p224_p9)  ;;  %s816_s12 = smov (!%p224_p9), 8   ;;  %s817_s18 = smov (!%p224_p9), 16   ;;  %vm532_vm3 = vcmask (!%p224_p9), 64512  }
  0x10   : > { %688 = vmatpush3.bf16.msra.mxu0 (!%p224_p9), %v687_v3  ;;  %v696_v13 = vpack.c.bf16 (!%p224_p9), %v634_v10, %v633_v8  ;;  %v635_v14 = vld [vmem:[%s1008_s3 + $0x30] sm:$0xff] (!%p224_p9)  ;;  %v636_v15 = vld [vmem:[%s1008_s3 + $0x38] sm:$0xff] (!%p224_p9)  ;;  %v693_v16 = vpack.c.bf16 (!%p224_p9), %v352_v12, %v351_v11  ;;  %v629_v18 = vld [vmem:[%s1007_s2] ss:$0 sm:$0xff] (!%p224_p9)  ;;  %s253_s19 = sand.u32 (!%p224_p9), 1, %s803_s22   ;;  %s641_s26 = sshll.u32 (!%p224_p9), %s875_s25, 7 }
  0x11   : > { %695 = vmatprep.subr.bf16.mxu0 (!%p224_p9), %v813_v2  ;;  %691 = vmatpush3.bf16.msra.mxu1 (!%p224_p9), %v690_v9  ;;  %v699_v17 = vpack.c.bf16 (!%p224_p9), %v636_v15, %v635_v14  ;;  %v631_v23 = vld [vmem:[%s1009_s4] ss:$0 sm:$0xff] (!%p224_p9)  ;;  %v638_v24 = vld [vmem:[%s1009_s4 + $0x1] ss:$0 sm:$0xff] (!%p224_p9)  ;;  %s626_s20 = sshll.u32 (!%p224_p9), %s253_s19, 3  ;;  %vm535_vm4 = vcmask (!%p224_p9), 195584   ;;  %s962_s9 = scalar_lea.hbm (!%p224_p9), %s1011_s6, %s641_s26 }
  0x12   : > { %692 = vmatprep.subr.bf16.mxu1 (!%p224_p9), %v813_v2  ;;  %s255_s28 = scalar_lea.vmem (!%p224_p9), [#allocation2], %s626_s20  ;;  %s538_s10 = scalar_lea.sflag (!%p224_p9), [#allocation3], %s253_s19 }
  0x13   : > { %s551_s29 = sshll.u32 (!%p224_p9), %s255_s28, 4  ;;  %s818_s11 = smov (!%p224_p9), [#allocation2]   ;;  %s964_s29 = int_to_ptr.vmem [resolvable:$true] %s551_s29 }
  0x15   : > { %s910_s13 = scalar_select %p256_p10, %s875_s25, 1  ;;  %694 = vmatpush3.bf16.msra.mxu1 %v693_v16 }
  0x16   : > { %s749_s25 = scalar_lea.vmem %s964_s29, 128 }
  0x17   : > { %s627_s14 = sshll.u32 %s910_s13, 3  ;;  %p750_p11 = scmp.ne.s32.totalorder %s964_s29, %s749_s25 }
  0x18   : > { %s259_s17 = scalar_lea.vmem %s1005_s0, %s627_s14 }
  0x19   : > { %v264_v5 = vld [vmem:[%s259_s17] sm:$0xff]  ;;  %s263_s17 = scalar_lea.vmem %s1010_s5, %s627_s14  ;;  %p751_p12 = pnand %p750_p11, %p892_p5 }
  0x1a   : > { %662 = vmatmul.mubr.msk.f32.vlgmr.msra.gmra.mrb[0].mxu0 %vm274_vm1, %v264_v5  ;;  %v521_v34 = vld [vmem:[%s263_s17] sm:$0xff] }
  0x1b   : > { %683 = vmatprep.mubr.msk.f32.mxu0 %vm814_vm0, %v815_v4  ;;  %697 = vmatpush3.bf16.msra.mxu0 %v696_v13  ;;  %p752_p13 = pneg %p751_p12 }
  0x1c   : > { %698 = vmatprep.subr.bf16.mxu0 %v813_v2 }
  0x1f   : > { %700 = vmatpush3.bf16.msra.mxu0 %v699_v17 }
  0xed   : > { %v344_v19 = vpop.f32.mrb[0].mxu0 }
  0xee   : > { %v345_v20 = vadd.f32 %v629_v18, %v344_v19  ;;  %v663_v21 = vpop.f32.mrb[1].mxu0 }
  0xf0   : > { %745 = vtanh.f32 %v345_v20 }
  0xfa   : > { %v746_v22 = vpop.eup %745 }
  0xfb   : > { %673 = vmatmul.mubr.msk.f32.vlgmr.msra.gmra.mrb[0].mxu1 %vm360_vm2, %v746_v22  ;;  %684 = vmatmul.mubr.msk.f32.vlgmr.msra.gmra.mrb[2].mxu0 %vm360_vm2, %v746_v22 }
 0x1ce   : > { %v430_v25 = vpop.f32.mrb[0].mxu1  ;;  %v513_v26 = vpop.f32.mrb[2].mxu0 }
 0x1cf   : > { %v431_v27 = vadd.f32 %v631_v23, %v430_v25  ;;  %v514_v28 = vadd.f32 %v638_v24, %v513_v26  ;;  %v674_v29 = vpop.f32.mrb[1].mxu1  ;;  %v685_v30 = vpop.f32.mrb[3].mxu0 }
 0x1d1   : > { %v517_v31 = vmul.f32 0.5, %v514_v28  ;;  %525 = vrot.lane.b32.xlu0 %v431_v27, %s816_s12  ;;  %s753_s12 = sshll.u32 %s818_s11, 4  ;;  %s754_s12 = int_to_ptr.vmem [resolvable:$false] %s753_s12 }
 0x1d2   : > { %s755_s15 = scalar_lea.vmem %s754_s12, 256  ;;  %p756_p0 = scmp.lt.s32.totalorder %s964_s29, %s754_s12 }
 0x1d3   : > { %v518_v32 = vmul.f32 1.442695, %v517_v31  ;;  %p757_p1 = scmp.lt.s32.totalorder %s755_s15, %s749_s25 }
 0x1d5   : > { %747 = vpow2.f32 %v518_v32  ;;  %p758_p2 = por %p757_p1, %p756_p0 }
 0x1d7   : > { %p759_p3 = pnand %p758_p2, %p752_p13 }
 0x1df   : > { %v748_v33 = vpop.eup %747 }
 0x1e0   : > { %v520_v35 = vadd.f32 1e-08, %v748_v33 }
 0x1e2   : > { %529 = vrot.lane.b32.xlu0 %v520_v35, %s817_s18  ;;  %v522_v36 = vmul.f32 %v521_v34, %v520_v35 }
 0x1e4   : > { %v523_v37 = vadd.f32 %v522_v36, %v431_v27 }
 0x243   : > { %v526_v38 = vpop.permute.xlu0 %525 }
 0x244   : > { %v533_v39 = vsel %vm532_vm3, %v523_v37, %v526_v38 }
 0x254   : > { %v530_v40 = vpop.permute.xlu0 %529 }
 0x255   : > { %v534_v41 = vsel %vm274_vm1, %v533_v39, %v530_v40 }
 0x256   : > { %536 = vst.msk [vmem:[%s255_s28] sm:$0xff] %vm535_vm4, %v534_v41 }
 0x257   : > { %762 = shalt.err (!%p759_p3)
}
 0x258   : > { %s763_s16 = scalar_lea.hbm %s962_s9, 128  ;;  %s767_s19 = scalar_lea.hbm %s1011_s6, 256 }
 0x259   : > { %p764_p4 = scmp.ne.s32.totalorder %s962_s9, %s763_s16  ;;  %p768_p9 = scmp.lt.u32.totalorder %s962_s9, %s1011_s6 }
 0x25a   : > { %p769_p10 = scmp.lt.u32.totalorder %s767_s19, %s763_s16  ;;  %p771_p12 = scmp.lt.u32.totalorder %s763_s16, %s962_s9 }
 0x25b   : > { %p765_p7 = pnand %p764_p4, %p892_p5 }
 0x25c   : > { %p770_p11 = por %p769_p10, %p768_p9 }
 0x25d   : > { %p766_p8 = pneg %p765_p7 }
 0x25e   : > { %p772_p13 = por %p771_p12, %p770_p11 }
 0x260   : > { %p773_p0 = pnand %p772_p13, %p766_p8 }
 0x262   : > { %776 = shalt.err (!%p773_p0)
}
 0x263   : > { %701 = dma.vmem_to_hbm [thread:$0]  (%p892_p5), %s964_s29, 128, %s962_s9, %s538_s10  }
 0x264 PF: > { %p707_p1 = scmp.ge.s32.totalorder %s811_s24, 2  ;;  %s563_s28 = sand.u32 1, %s799_s21  }
 0x265   : > { %s564_s13 = scalar_lea.sflag [#allocation3], %s563_s28 }
 0x266   : > { %p704_p2 = pnand %p707_p1, %p896_p6 }
 0x268   : > { %794 = dma.done.wait (!%p704_p2), %s564_s13, 128  }
 0x269   : > { %796 = vsyncadd (!%p704_p2), %s564_s13, 4294967168  ;;  %p16_p3 = scmp.ge.s32.totalorder %s879_s27, 4   ;;  %s1014_s21 = smov %s803_s22 }
 0x26a   : > { %s1015_s22 = smov %s807_s23  ;;  %s1016_s23 = smov %s890_s30 }
 0x26b   : > { %s1017_s24 = smov %s879_s27  ;;  %18 = sbr.rel (!%p16_p3) target bundleno = 3 (0x3), region = 84 }
 0x272   :  { %569 = vsyncpa [#allocation3], 1 }
 0x273   :  { %571 = vsyncpa [#allocation3 + $0x1], 1 }

</bundles_post_ra>
